<compile_context>
chip_gen: v5e
topology: v5e:2x2
jax: 0.10.0
libtpu: 0.0.40
codegen_flags: <defaults>
</compile_context>

<pallas_src>
import functools

import jax
import jax.numpy as jnp
import numpy as np
from jax import lax
from jax.experimental import pallas as pl
from jax.experimental.pallas import tpu as pltpu

EPSILON = 1e-06
_NEG_BIG = -1e30  # exp(_NEG_BIG) == 0 in f32; safe "minus infinity" for masking


def _round_up(x, m):
    return (x + m - 1) // m * m


# ----------------------------------------------------------------------------
# Kernel helpers
# ----------------------------------------------------------------------------
def _row_col_masks(tile_idx, ta, npad, n_valid, a_valid):
    """Global row/col indices and validity / self-column masks for one tile."""
    row = tile_idx * ta + lax.broadcasted_iota(jnp.int32, (ta, npad), 0)
    col = lax.broadcasted_iota(jnp.int32, (ta, npad), 1)
    col_valid = col < n_valid                      # real (non-pad) contrast cols
    row_valid = row < a_valid                      # real (non-pad) anchor rows
    logits_mask = jnp.logical_and(col_valid, col != row)   # drop self column
    return col_valid, row_valid, logits_mask


def _tile_partial(s, col_valid, logits_mask, pos_mask):
    """Sum over the tile's rows of -mean_log_prob_pos (SupCon row loss)."""
    # Row max over valid columns (self column included, like the reference).
    s_max = jnp.max(jnp.where(col_valid, s, _NEG_BIG), axis=1, keepdims=True)
    logits = s - s_max
    # Softmax denominator over non-self, non-pad columns.
    exp_logits = jnp.exp(jnp.where(logits_mask, logits, _NEG_BIG))
    log_denom = jnp.log(jnp.sum(exp_logits, axis=1, keepdims=True) + EPSILON)
    log_probs = logits - log_denom

    m = pos_mask.astype(jnp.float32)
    n_pos = jnp.sum(m, axis=1, keepdims=True)
    n_pos = jnp.where(n_pos < EPSILON, 1.0, n_pos)
    mean_log_prob_pos = jnp.sum(m * log_probs, axis=1, keepdims=True) / n_pos
    return -jnp.sum(mean_log_prob_pos)


# ----------------------------------------------------------------------------
# Kernels
# ----------------------------------------------------------------------------
def _supcon_label_kernel(a_ref, c_ref, alab_ref, clab_ref, out_ref, *,
                         inv_temp, n_valid, a_valid):
    """Positive mask rebuilt in-kernel from per-row / per-column labels."""
    ta = a_ref.shape[0]
    npad = c_ref.shape[0]
    i = pl.program_id(0)

    # (TA, Np) = anchor_tile @ contrast.T, contracting last dims (no transpose).
    s = lax.dot_general(a_ref[...], c_ref[...],
                        dimension_numbers=(((1,), (1,)), ((), ())),
                        preferred_element_type=jnp.float32) * inv_temp

    col_valid, row_valid, logits_mask = _row_col_masks(i, ta, npad, n_valid, a_valid)
    label_eq = alab_ref[...] == clab_ref[...]          # (TA,1) vs (1,Np) -> (TA,Np)
    pos_mask = label_eq & logits_mask & row_valid

    partial = _tile_partial(s, col_valid, logits_mask, pos_mask)
    out_ref[...] = jnp.broadcast_to(partial.reshape(1, 1), out_ref.shape)


def _supcon_mask_kernel(a_ref, c_ref, posmask_ref, out_ref, *,
                        inv_temp, n_valid, a_valid):
    """Fallback path for an explicit (possibly asymmetric) user-supplied mask."""
    ta = a_ref.shape[0]
    npad = c_ref.shape[0]
    i = pl.program_id(0)

    s = lax.dot_general(a_ref[...], c_ref[...],
                        dimension_numbers=(((1,), (1,)), ((), ())),
                        preferred_element_type=jnp.float32) * inv_temp

    col_valid, row_valid, logits_mask = _row_col_masks(i, ta, npad, n_valid, a_valid)
    pos_mask = (posmask_ref[...] > 0.5) & logits_mask & row_valid

    partial = _tile_partial(s, col_valid, logits_mask, pos_mask)
    out_ref[...] = jnp.broadcast_to(partial.reshape(1, 1), out_ref.shape)


# ----------------------------------------------------------------------------
# Wrapper
# ----------------------------------------------------------------------------
def contrastive_loss(features, labels=None, mask=None, *, temperature=0.1,
                     contrast_mode="all", matmul_dtype=None):
    """JAX/Pallas equivalent of ContrastiveLoss.forward (returns a scalar).

    matmul_dtype: optional dtype (e.g. jnp.bfloat16) for the MXU inputs; the
    accumulation and all softmax math stay in float32.
    """
    if features.ndim < 3:
        raise ValueError(f"Expected input with at least 3 dims, got {features.shape}.")
    bsz = features.shape[0]
    n_views = features.shape[1]
    if features.ndim > 3:
        features = features.reshape(bsz, n_views, -1)
    if labels is not None and mask is not None:
        raise ValueError("Cannot define both 'labels' and 'mask'.")
    D = features.shape[-1]

    # torch.cat(torch.unbind(features, 1), 0): view-major flattening.
    contrast_feature = jnp.transpose(features, (1, 0, 2)).reshape(n_views * bsz, D)
    if contrast_mode == "one":
        anchor_feature, anchor_count = features[:, 0], 1
    elif contrast_mode == "all":
        anchor_feature, anchor_count = contrast_feature, n_views
    else:
        raise ValueError(f"Unknown contrast mode: {contrast_mode}.")

    N = n_views * bsz
    A = anchor_count * bsz

    # ---- padded / tiled geometry (lane-dense: multiples of 128 / 8) ---------
    Np = _round_up(N, 128)
    Dp = _round_up(D, 128)
    A8 = _round_up(A, 8)
    ta = min(256, A8)
    # Keep the (TA, Np) f32 intermediates well under the scoped VMEM budget.
    budget = 24 * 1024 * 1024
    while ta > 8 and 4 * ta * Np * 4 > budget:
        ta = max(8, _round_up(ta // 2, 8))
    A_pad = _round_up(A, ta)
    num_tiles = A_pad // ta

    feat_dtype = jnp.dtype(matmul_dtype) if matmul_dtype is not None else features.dtype
    fbytes = jnp.dtype(feat_dtype).itemsize

    def _pad2(x, rows, cols, dtype):
        x = x.astype(dtype)
        return jnp.pad(x, ((0, rows - x.shape[0]), (0, cols - x.shape[1])))

    a_p = _pad2(anchor_feature, A_pad, Dp, feat_dtype)       # (A_pad, Dp)
    c_p = _pad2(contrast_feature, Np, Dp, feat_dtype)        # (Np, Dp)

    # ---- pallas_call plumbing ------------------------------------------------
    a_spec = pl.BlockSpec((ta, Dp), lambda i: (i, 0))
    c_spec = pl.BlockSpec((Np, Dp), lambda i: (0, 0))        # resident contrast
    out_spec = pl.BlockSpec((8, 128), lambda i: (i, 0))      # one (8,128) slab / tile
    out_shape = jax.ShapeDtypeStruct((num_tiles * 8, 128), jnp.float32)
    grid = (num_tiles,)
    inv_temp = float(1.0 / temperature)

    est_vmem = (2 * Np * Dp * fbytes          # resident contrast (+ buffering)
                + 2 * ta * Dp * fbytes        # double-buffered anchor tile
                + 8 * ta * Np * 4)            # f32 logits / exp / mask temporaries
    vmem_limit = int(min(64 * 2 ** 20, max(32 * 2 ** 20, est_vmem)))
    cparams = pltpu.CompilerParams(dimension_semantics=("parallel",),
                                   vmem_limit_bytes=vmem_limit)

    if mask is None:
        # SimCLR: unique per-sample "labels"; SupCon: user labels.
        if labels is None:
            labels_eff = jnp.arange(bsz, dtype=jnp.int32)
        else:
            labels_eff = jnp.asarray(labels).reshape(-1).astype(jnp.int32)
            if labels_eff.shape[0] != bsz:
                raise ValueError(
                    f"Num of labels doesn't match batch size: {labels_eff.shape[0]} != {bsz}.")
        c_lab = jnp.tile(labels_eff, (n_views,))                       # (N,)
        a_lab = c_lab[:A] if contrast_mode == "all" else labels_eff    # (A,)
        a_lab_p = jnp.pad(a_lab, (0, A_pad - A), constant_values=-1).reshape(A_pad, 1)
        c_lab_p = jnp.pad(c_lab, (0, Np - N), constant_values=-2).reshape(1, Np)

        kernel = functools.partial(_supcon_label_kernel, inv_temp=inv_temp,
                                   n_valid=N, a_valid=A)
        out = pl.pallas_call(
            kernel,
            out_shape=out_shape,
            grid=grid,
            in_specs=[a_spec, c_spec,
                      pl.BlockSpec((ta, 1), lambda i: (i, 0)),
                      pl.BlockSpec((1, Np), lambda i: (0, 0))],
            out_specs=out_spec,
            compiler_params=cparams,
        )(a_p, c_p, a_lab_p, c_lab_p)
    else:
        # Arbitrary user mask: tile it per anchor block (rare path).
        base = jnp.asarray(mask).astype(jnp.float32)
        full_mask = jnp.tile(base, (anchor_count, n_views))            # (A, N)
        full_mask = jnp.pad(full_mask, ((0, A_pad - A), (0, Np - N)))
        kernel = functools.partial(_supcon_mask_kernel, inv_temp=inv_temp,
                                   n_valid=N, a_valid=A)
        out = pl.pallas_call(
            kernel,
            out_shape=out_shape,
            grid=grid,
            in_specs=[a_spec, c_spec,
                      pl.BlockSpec((ta, Np), lambda i: (i, 0))],
            out_specs=out_spec,
            compiler_params=cparams,
        )(a_p, c_p, full_mask)

    # Each (8,128) slab holds its tile's partial sum broadcast; pick one element.
    partials = out.reshape(num_tiles, 8, 128)[:, 0, 0]
    return jnp.sum(partials) / A


# ----------------------------------------------------------------------------
# Pure-JAX reference (mirrors the PyTorch forward) for verification
# ----------------------------------------------------------------------------
def _reference_loss(features, labels=None, temperature=0.1, contrast_mode="all"):
    bsz, n_views, D = features.shape
    if labels is None:
        base_mask = jnp.eye(bsz, dtype=jnp.float32)
    else:
        labels = labels.reshape(-1, 1)
        base_mask = (labels == labels.T).astype(jnp.float32)
    contrast_feature = jnp.transpose(features, (1, 0, 2)).reshape(n_views * bsz, D)
    if contrast_mode == "one":
        anchor_feature, anchor_count = features[:, 0], 1
    else:
        anchor_feature, anchor_count = contrast_feature, n_views
    s = (anchor_feature @ contrast_feature.T) / temperature
    logits = s - jnp.max(s, axis=1, keepdims=True)
    m = jnp.tile(base_mask, (anchor_count, n_views))
    A, N = m.shape
    logits_mask = 1.0 - jnp.eye(A, N, dtype=jnp.float32)
    m = m * logits_mask
    exp_logits = jnp.exp(logits) * logits_mask
    log_probs = logits - jnp.log(exp_logits.sum(1, keepdims=True) + EPSILON)
    mpp = m.sum(1)
    mpp = jnp.where(mpp < EPSILON, 1.0, mpp)
    mean_log_prob_pos = (m * log_probs).sum(1) / mpp
    return jnp.mean(-mean_log_prob_pos)


if __name__ == "__main__":
    key = jax.random.PRNGKey(0)
    k1, k2 = jax.random.split(key)

    bsz, n_views, D = 8, 2, 32
    features = jax.random.normal(k1, (bsz, n_views, D), dtype=jnp.float32)
    features = features / jnp.linalg.norm(features, axis=-1, keepdims=True)
    labels = jax.random.randint(k2, (bsz,), 0, 4)

    # f32 matmul path (default): SimCLR, SupCon ('all' and 'one'), explicit mask.
    loss_simclr = contrastive_loss(features, temperature=0.1, contrast_mode="all")
    loss_supcon = contrastive_loss(features, labels=labels, temperature=0.1,
                                   contrast_mode="all")
    loss_one = contrastive_loss(features, labels=labels, temperature=0.1,
                                contrast_mode="one")
    eq_mask = (labels[:, None] == labels[None, :]).astype(jnp.float32)
    loss_mask = contrastive_loss(features, mask=eq_mask, temperature=0.1,
                                 contrast_mode="all")
    # bf16 MXU-input path (halves feature DMA, f32 accumulate).
    loss_bf16 = contrastive_loss(features, labels=labels, temperature=0.1,
                                 contrast_mode="all", matmul_dtype=jnp.bfloat16)
    jax.block_until_ready((loss_simclr, loss_supcon, loss_one, loss_mask, loss_bf16))

    ref_simclr = _reference_loss(features, None, 0.1, "all")
    ref_supcon = _reference_loss(features, labels, 0.1, "all")
    ref_one = _reference_loss(features, labels, 0.1, "one")

    np.testing.assert_allclose(np.asarray(loss_simclr), np.asarray(ref_simclr),
                               rtol=1e-4, atol=1e-5)
    np.testing.assert_allclose(np.asarray(loss_supcon), np.asarray(ref_supcon),
                               rtol=1e-4, atol=1e-5)
    np.testing.assert_allclose(np.asarray(loss_one), np.asarray(ref_one),
                               rtol=1e-4, atol=1e-5)
    np.testing.assert_allclose(np.asarray(loss_mask), np.asarray(ref_supcon),
                               rtol=1e-4, atol=1e-5)
    np.testing.assert_allclose(np.asarray(loss_bf16), np.asarray(ref_supcon),
                               rtol=5e-2, atol=5e-3)
    print("KERNEL_OK")
</pallas_src>

<mosaic_0001>
module attributes {stable_mosaic.version = 11 : i64} {
  func.func @_supcon_label_kernel(%arg0: i32, %arg1: memref<16x128xf32, #tpu.memory_space<vmem>>, %arg2: memref<128x128xf32, #tpu.memory_space<vmem>>, %arg3: memref<16x1xi32, #tpu.memory_space<vmem>>, %arg4: memref<1x128xi32, #tpu.memory_space<vmem>>, %arg5: memref<8x128xf32, #tpu.memory_space<vmem>>) attributes {dimension_semantics = [#tpu.dimension_semantics<parallel>], iteration_bounds = array<i64: 1>, scalar_prefetch = 0 : i64, scratch_operands = 0 : i64, tpu.core_type = #tpu.core_type<tc>, window_params = [{transform_indices = @transform_0, window_bounds = array<i64: 16, 128>}, {pipeline_mode = #tpu.pipeline_mode<synchronous>, transform_indices = @transform_1, window_bounds = array<i64: 128, 128>}, {transform_indices = @transform_2, window_bounds = array<i64: 16, 1>}, {pipeline_mode = #tpu.pipeline_mode<synchronous>, transform_indices = @transform_3, window_bounds = array<i64: 1, 128>}, {transform_indices = @transform_4, window_bounds = array<i64: 8, 128>}]} {
    %c0 = arith.constant 0 : index
    %c0_0 = arith.constant 0 : index
    %0 = vector.load %arg1[%c0, %c0_0] : memref<16x128xf32, #tpu.memory_space<vmem>>, vector<16x128xf32>
    %c0_1 = arith.constant 0 : index
    %c0_2 = arith.constant 0 : index
    %1 = vector.load %arg2[%c0_1, %c0_2] : memref<128x128xf32, #tpu.memory_space<vmem>>, vector<128x128xf32>
    %cst = arith.constant dense<0.000000e+00> : vector<16x128xf32>
    %2 = tpu.matmul %0, %1, %cst {dimension_numbers = #tpu.dot_dimension_numbers<[1], [1], [0], [0], [0, 0, 1, 0], [], []>} : vector<16x128xf32>, vector<128x128xf32>, vector<16x128xf32> -> vector<16x128xf32>
    %cst_3 = arith.constant 1.000000e+01 : f32
    %3 = vector.broadcast %cst_3 : f32 to vector<16x128xf32>
    %4 = arith.mulf %2, %3 : vector<16x128xf32>
    %c16_i32 = arith.constant 16 : i32
    %5 = arith.muli %arg0, %c16_i32 : i32
    %6 = tpu.iota {dimensions = array<i32: 0>} : vector<16x128xi32>
    %7 = vector.broadcast %5 : i32 to vector<16x128xi32>
    %8 = arith.addi %7, %6 : vector<16x128xi32>
    %9 = tpu.iota {dimensions = array<i32: 1>} : vector<16x128xi32>
    %c16_i32_4 = arith.constant 16 : i32
    %10 = vector.broadcast %c16_i32_4 : i32 to vector<16x128xi32>
    %11 = arith.cmpi slt, %9, %10 : vector<16x128xi32>
    %c16_i32_5 = arith.constant 16 : i32
    %12 = vector.broadcast %c16_i32_5 : i32 to vector<16x128xi32>
    %13 = arith.cmpi slt, %8, %12 : vector<16x128xi32>
    %14 = arith.cmpi ne, %9, %8 : vector<16x128xi32>
    %15 = arith.andi %11, %14 : vector<16x128xi1>
    %c0_6 = arith.constant 0 : index
    %c0_7 = arith.constant 0 : index
    %16 = vector.load %arg3[%c0_6, %c0_7] : memref<16x1xi32, #tpu.memory_space<vmem>>, vector<16x1xi32>
    %c0_8 = arith.constant 0 : index
    %c0_9 = arith.constant 0 : index
    %17 = vector.load %arg4[%c0_8, %c0_9] : memref<1x128xi32, #tpu.memory_space<vmem>>, vector<1x128xi32>
    %18 = vector.broadcast %16 : vector<16x1xi32> to vector<16x128xi32>
    %19 = vector.broadcast %17 : vector<1x128xi32> to vector<16x128xi32>
    %20 = arith.cmpi eq, %18, %19 : vector<16x128xi32>
    %21 = arith.andi %20, %15 : vector<16x128xi1>
    %22 = arith.andi %21, %13 : vector<16x128xi1>
    %cst_10 = arith.constant -1.000000e+30 : f32
    %23 = vector.broadcast %cst_10 : f32 to vector<16x128xf32>
    %24 = arith.select %11, %4, %23 : vector<16x128xi1>, vector<16x128xf32>
    %cst_11 = arith.constant dense<0xFF800000> : vector<16xf32>
    %25 = vector.multi_reduction <maximumf>, %24, %cst_11 [1] : vector<16x128xf32> to vector<16xf32>
    %26 = vector.shape_cast %25 : vector<16xf32> to vector<16x1xf32>
    %27 = vector.broadcast %26 : vector<16x1xf32> to vector<16x128xf32>
    %28 = arith.subf %4, %27 : vector<16x128xf32>
    %cst_12 = arith.constant -1.000000e+30 : f32
    %29 = vector.broadcast %cst_12 : f32 to vector<16x128xf32>
    %30 = arith.select %15, %28, %29 : vector<16x128xi1>, vector<16x128xf32>
    %31 = math.exp %30 : vector<16x128xf32>
    %cst_13 = arith.constant dense<0.000000e+00> : vector<16xf32>
    %32 = vector.multi_reduction <add>, %31, %cst_13 [1] : vector<16x128xf32> to vector<16xf32>
    %33 = vector.shape_cast %32 : vector<16xf32> to vector<16x1xf32>
    %cst_14 = arith.constant 9.99999997E-7 : f32
    %34 = vector.broadcast %cst_14 : f32 to vector<16x1xf32>
    %35 = arith.addf %33, %34 : vector<16x1xf32>
    %36 = math.log %35 : vector<16x1xf32>
    %37 = vector.broadcast %36 : vector<16x1xf32> to vector<16x128xf32>
    %38 = arith.subf %28, %37 : vector<16x128xf32>
    %39 = arith.extui %22 : vector<16x128xi1> to vector<16x128xi32>
    %40 = arith.sitofp %39 : vector<16x128xi32> to vector<16x128xf32>
    %cst_15 = arith.constant dense<0.000000e+00> : vector<16xf32>
    %41 = vector.multi_reduction <add>, %40, %cst_15 [1] : vector<16x128xf32> to vector<16xf32>
    %42 = vector.shape_cast %41 : vector<16xf32> to vector<16x1xf32>
    %cst_16 = arith.constant 9.99999997E-7 : f32
    %43 = vector.broadcast %cst_16 : f32 to vector<16x1xf32>
    %44 = arith.cmpf olt, %42, %43 : vector<16x1xf32>
    %cst_17 = arith.constant 1.000000e+00 : f32
    %45 = vector.broadcast %cst_17 : f32 to vector<16x1xf32>
    %46 = arith.select %44, %45, %42 : vector<16x1xi1>, vector<16x1xf32>
    %47 = arith.mulf %40, %38 : vector<16x128xf32>
    %cst_18 = arith.constant dense<0.000000e+00> : vector<16xf32>
    %48 = vector.multi_reduction <add>, %47, %cst_18 [1] : vector<16x128xf32> to vector<16xf32>
    %49 = vector.shape_cast %48 : vector<16xf32> to vector<16x1xf32>
    %50 = arith.divf %49, %46 : vector<16x1xf32>
    %51 = vector.shape_cast %50 : vector<16x1xf32> to vector<1x16x1xf32>
    %cst_19 = arith.constant dense<0.000000e+00> : vector<1xf32>
    %52 = vector.multi_reduction <add>, %51, %cst_19 [1, 2] : vector<1x16x1xf32> to vector<1xf32>
    %53 = vector.shape_cast %52 : vector<1xf32> to vector<1x1x1xf32>
    %54 = vector.extract %53[0, 0, 0] : f32 from vector<1x1x1xf32>
    %cst_20 = arith.constant 0.000000e+00 : f32
    %55 = arith.subf %cst_20, %54 : f32
    %56 = vector.broadcast %55 : f32 to vector<1x1xf32>
    %57 = vector.shape_cast %56 : vector<1x1xf32> to vector<1x1xf32>
    %58 = vector.broadcast %57 : vector<1x1xf32> to vector<8x128xf32>
    %c0_21 = arith.constant 0 : index
    %c0_22 = arith.constant 0 : index
    %59 = vector.load %arg5[%c0_21, %c0_22] : memref<8x128xf32, #tpu.memory_space<vmem>>, vector<8x128xf32>
    tpu.vector_store %arg5[%c0_21, %c0_22], %58 {strides = array<i32>} : memref<8x128xf32, #tpu.memory_space<vmem>>, vector<8x128xf32>,
    return
  }
  func.func @transform_0(%arg0: i32) -> (i32, i32) {
    %c0_i32 = arith.constant 0 : i32
    %c0_i32_0 = arith.constant 0 : i32
    return %arg0, %c0_i32 : i32, i32
  }
  func.func @transform_1(%arg0: i32) -> (i32, i32) {
    %c0_i32 = arith.constant 0 : i32
    %c0_i32_0 = arith.constant 0 : i32
    %c0_i32_1 = arith.constant 0 : i32
    return %c0_i32, %c0_i32_0 : i32, i32
  }
  func.func @transform_2(%arg0: i32) -> (i32, i32) {
    %c0_i32 = arith.constant 0 : i32
    %c0_i32_0 = arith.constant 0 : i32
    return %arg0, %c0_i32 : i32, i32
  }
  func.func @transform_3(%arg0: i32) -> (i32, i32) {
    %c0_i32 = arith.constant 0 : i32
    %c0_i32_0 = arith.constant 0 : i32
    %c0_i32_1 = arith.constant 0 : i32
    return %c0_i32, %c0_i32_0 : i32, i32
  }
  func.func @transform_4(%arg0: i32) -> (i32, i32) {
    %c0_i32 = arith.constant 0 : i32
    %c0_i32_0 = arith.constant 0 : i32
    return %arg0, %c0_i32 : i32, i32
  }
}

</mosaic_0001>

<bundles_post_ra>
// kernel: tpu_custom_call.1
= control target key start
LH: loop header
LB: loop body
LE: loop exit
PB: predicated region body
PF: predicated region fallthrough
CT: control target
= control target key end

     0   :  { %9 = vsyncpa [#allocation3], 0  ;;  %s373_s0 = inlined_call_operand.vmem [shape: f32[16,128], index: 0, kind: input, shape index: {}]   ;;  %s374_s1 = inlined_call_operand.hbm [shape: f32[128,128], index: 1, kind: input, shape index: {}]   ;;  %s375_s2 = inlined_call_operand.vmem [shape: s32[16,1], index: 2, kind: input, shape index: {}]   ;;  %s376_s3 = inlined_call_operand.vmem [shape: s32[1,128], index: 3, kind: input, shape index: {}]   ;;  %s377_s4 = inlined_call_operand.hbm [shape: f32[8,128], index: 4, kind: output, shape index: {}]  }
   0x1   :  { %10 = vsyncpa [#allocation4], 0  ;;  %s17_s17 = sshll.u32 %s374_s1, 4  ;;  %s309_s18 = smov [#allocation2]   ;;  %s18_s17 = int_to_ptr.hbm [resolvable:$true] %s17_s17 }
   0x2   :  { %s19_s19 = sshll.u32 %s309_s18, 4  ;;  %s310_s20 = smov 128   ;;  %s20_s19 = int_to_ptr.vmem [resolvable:$true] %s19_s19 }
   0x3   :  { %s311_s21 = smov 8  }
   0x4   :  { %25 = dma.hbm_to_vmem [thread:$0]  %s18_s17, 2048, %s20_s19, [#allocation3], %s310_s20, %s310_s20, %s311_s21  }
   0x5   :  { %305 = dma.done.wait [#allocation3], 2048  }
   0x6   :  { %306 = vsyncadd [#allocation3], 4294965248  ;;  %v51_v0 = vld [vmem:[#allocation2 + $0x78] sm:$0xff]  ;;  %v50_v1 = vld [vmem:[#allocation2 + $0x70] sm:$0xff]  ;;  %v312_v19 = vmov 0   ;;  %v78_v21 = vlaneseq  ;;  %v313_v34 = vmov 0.0  }
   0x7   :  { %52 = vmatpush.xpose.msra.mxu0 %v51_v0  ;;  %218 = vmatpush.xpose.msra.mxu1 %v51_v0  ;;  %v49_v2 = vld [vmem:[#allocation2 + $0x68] sm:$0xff]  ;;  %v48_v3 = vld [vmem:[#allocation2 + $0x60] sm:$0xff]  ;;  %v47_v4 = vld [vmem:[#allocation2 + $0x58] sm:$0xff]  ;;  %s206_s6 = sshll.u32 %s377_s4, 4  ;;  %s207_s6 = int_to_ptr.hbm [resolvable:$true] %s206_s6 }
   0x8   :  { %v46_v5 = vld [vmem:[#allocation2 + $0x50] sm:$0xff]  ;;  %v45_v6 = vld [vmem:[#allocation2 + $0x48] sm:$0xff]  ;;  %v44_v7 = vld [vmem:[#allocation2 + $0x40] sm:$0xff]  ;;  %242 = vset.pattern.permute.xlu1 %v312_v19  ;;  %243 = vset.pattern.permute.xlu0 %v312_v19  ;;  %v85_v22 = vand.u32 127, %v78_v21  ;;  %v79_v29 = vshrl.u32 %v78_v21, 7 }
   0x9   :  { %v43_v8 = vld [vmem:[#allocation2 + $0x38] sm:$0xff]  ;;  %v42_v9 = vld [vmem:[#allocation2 + $0x30] sm:$0xff]  ;;  %v41_v10 = vld [vmem:[#allocation2 + $0x28] sm:$0xff] }
   0xa   :  { %v40_v11 = vld [vmem:[#allocation2 + $0x20] sm:$0xff]  ;;  %v39_v12 = vld [vmem:[#allocation2 + $0x18] sm:$0xff]  ;;  %v38_v13 = vld [vmem:[#allocation2 + $0x10] sm:$0xff]  ;;  %vm86_vm0 = vcmp.lt.s32.totalorder %v85_v22, 16  ;;  %vm89_vm1 = vcmp.ne.s32.totalorder %v85_v22, %v79_v29  ;;  %v80_v32 = vadd.s32 8, %v79_v29 }
   0xb   :  { %53 = vmatpush.xpose.msra.mxu0 %v50_v1  ;;  %219 = vmatpush.xpose.msra.mxu1 %v50_v1  ;;  %v37_v14 = vld [vmem:[#allocation2 + $0x8] sm:$0xff]  ;;  %v36_v15 = vld [vmem:[#allocation2] sm:$0xff]  ;;  %vm361_vm2 = vmand %vm86_vm0, %vm89_vm1 }
   0xc   :  { %v34_v16 = vld [vmem:[%s373_s0] sm:$0xff]  ;;  %v35_v17 = vld [vmem:[%s373_s0 + $0x8] sm:$0xff]  ;;  %vm90_vm5 = vcmp.ne.s32.totalorder %v85_v22, %v80_v32 }
   0xd   :  { %v93_v18 = vld [vmem:[%s375_s2] sm:$0xff]  ;;  %v94_v20 = vld [vmem:[%s375_s2 + $0x8] sm:$0xff]  ;;  %vm92_vm6 = vmand %vm86_vm0, %vm90_vm5  ;;  %s314_s2 = smov [#allocation5]  }
   0xe   :  { %97 = vperm.xlu1 %242, %v93_v18   ;;  %v244_v30 = vld [vmem:[%s376_s3] ss:$0 sm:$0xff]  ;;  %s204_s3 = sshll.u32 %s314_s2, 4  ;;  %s205_s3 = int_to_ptr.vmem [resolvable:$true] %s204_s3 }
   0xf   :  { %54 = vmatpush.xpose.msra.mxu0 %v49_v2  ;;  %220 = vmatpush.xpose.msra.mxu1 %v49_v2 }
  0x13   :  { %55 = vmatpush.xpose.msra.mxu0 %v48_v3  ;;  %221 = vmatpush.xpose.msra.mxu1 %v48_v3 }
  0x16   :  { %100 = vperm.xlu1 %242, %v94_v20  }
  0x17   :  { %56 = vmatpush.xpose.msra.mxu0 %v47_v4  ;;  %222 = vmatpush.xpose.msra.mxu1 %v47_v4 }
  0x1b   :  { %57 = vmatpush.xpose.msra.mxu0 %v46_v5  ;;  %223 = vmatpush.xpose.msra.mxu1 %v46_v5 }
  0x1f   :  { %58 = vmatpush.xpose.msra.mxu0 %v45_v6  ;;  %224 = vmatpush.xpose.msra.mxu1 %v45_v6 }
  0x23   :  { %59 = vmatpush.xpose.msra.mxu0 %v44_v7  ;;  %225 = vmatpush.xpose.msra.mxu1 %v44_v7 }
  0x27   :  { %60 = vmatpush.xpose.msra.mxu0 %v43_v8  ;;  %226 = vmatpush.xpose.msra.mxu1 %v43_v8 }
  0x2b   :  { %61 = vmatpush.xpose.msra.mxu0 %v42_v9  ;;  %227 = vmatpush.xpose.msra.mxu1 %v42_v9 }
  0x2f   :  { %62 = vmatpush.xpose.msra.mxu0 %v41_v10  ;;  %228 = vmatpush.xpose.msra.mxu1 %v41_v10 }
  0x33   :  { %63 = vmatpush.xpose.msra.mxu0 %v40_v11  ;;  %229 = vmatpush.xpose.msra.mxu1 %v40_v11 }
  0x37   :  { %64 = vmatpush.xpose.msra.mxu0 %v39_v12  ;;  %230 = vmatpush.xpose.msra.mxu1 %v39_v12 }
  0x3b   :  { %65 = vmatpush.xpose.msra.mxu0 %v38_v13  ;;  %231 = vmatpush.xpose.msra.mxu1 %v38_v13 }
  0x3f   :  { %66 = vmatpush.xpose.msra.mxu0 %v37_v14  ;;  %232 = vmatpush.xpose.msra.mxu1 %v37_v14 }
  0x43   :  { %67 = vmatpush.xpose.msra.mxu0 %v36_v15  ;;  %233 = vmatpush.xpose.msra.mxu1 %v36_v15 }
  0x46   :  { %68 = vmatmul.f32.vlgmr.msra.gmra.mxu0 %v34_v16  ;;  %71 = vmatmul.f32.vlgmr.msra.gmra.mxu1 %v35_v17 }
  0x80   :  { %v98_v31 = vpop.permute.xlu1 %97 }
  0x81   :  { %vm103_vm3 = vcmp.eq.s32.totalorder %v98_v31, %v244_v30 }
  0x82   :  { %vm105_vm4 = vmand %vm103_vm3, %vm361_vm2  ;;  %vm183_vm3 = vcmask 7168  }
  0x83   :  { %v216_v35 = vsel %vm105_vm4, 1.0, %v313_v34 }
  0x88   :  { %v101_v36 = vpop.permute.xlu1 %100 }
  0x89   :  { %vm104_vm7 = vcmp.eq.s32.totalorder %v101_v36, %v244_v30 }
  0x8a   :  { %vm106_vm8 = vmand %vm104_vm7, %vm92_vm6 }
  0x8b   :  { %v217_v38 = vsel %vm106_vm8, 1.0, %v313_v34 }
  0x8c   :  { %141 = vadd.xlane.f32.xlu1 %v217_v38 }
  0xc3   :  { %v69_v23 = vpop.f32.mrf.mxu0  ;;  %v72_v25 = vpop.f32.mrf.mxu1 }
  0xc4   :  { %v75_v24 = vmul.f32 10.0, %v69_v23  ;;  %v76_v27 = vmul.f32 10.0, %v72_v25 }
  0xc6   :  { %v109_v26 = vsel %vm86_vm0, %v75_v24, -1e+30  ;;  %v110_v28 = vsel %vm86_vm0, %v76_v27, -1e+30 }
  0xc7   :  { %111 = vmax.xlane.f32.xlu0 %v109_v26 }
  0xcf   :  { %113 = vmax.xlane.f32.xlu0 %v110_v28 }
  0xd7   :  { %139 = vadd.xlane.f32.xlu0 %v216_v35 }
  0xff   :  { %v142_v61 = vpop.xlane.xlu1 %141 }
 0x100   :  { %vm144_vm10 = vcmp.lt.f32.partialorder %v142_v61, 1e-06 }
 0x101   :  { %v146_v63 = vsel %vm144_vm10, 1.0, %v142_v61 }
 0x102   :  { %vm173_vm13 = vweird.f32 %v146_v63  ;;  %v179_v11 = vand.u32 2147483648, %v146_v63  ;;  %v177_v13 = vand.u32 2147483647, %v146_v63 }
 0x104   :  { %v180_v17 = vor.u32 1.1754944e-38, %v179_v11 }
 0x13a   :  { %v112_v37 = vpop.xlane.xlu0 %111 }
 0x13b   :  { %v115_v39 = vsub.f32 %v75_v24, %v112_v37 }
 0x13d   :  { %v117_v40 = vsel %vm361_vm2, %v115_v39, -1e+30  ;;  %vm178_vm2 = vcmp.eq.f32.partialorder %v177_v13, 8.507059e+37 }
 0x13e   :  { %v119_v41 = vmul.f32 1.442695, %v117_v40 }
 0x140   :  { %245 = vpow2.f32 %v119_v41 }
 0x142   :  { %v114_v42 = vpop.xlane.xlu0 %113 }
 0x143   :  { %v116_v43 = vsub.f32 %v76_v27, %v114_v42 }
 0x145   :  { %v118_v44 = vsel %vm92_vm6, %v116_v43, -1e+30 }
 0x146   :  { %v246_v45 = vpop.eup %245  ;;  %v121_v46 = vmul.f32 1.442695, %v118_v44 }
 0x147   :  { %123 = vadd.xlane.f32.xlu2 %v246_v45 }
 0x148   :  { %247 = vpow2.f32 %v121_v46 }
 0x14a   :  { %v140_v60 = vpop.xlane.xlu0 %139 }
 0x14b   :  { %vm143_vm9 = vcmp.lt.f32.partialorder %v140_v60, 1e-06 }
 0x14c   :  { %v145_v62 = vsel %vm143_vm9, 1.0, %v140_v60 }
 0x14d   :  { %vm158_vm11 = vweird.f32 %v145_v62  ;;  %v164_v8 = vand.u32 2147483648, %v145_v62  ;;  %v162_v10 = vand.u32 2147483647, %v145_v62 }
 0x14e   :  { %v248_v47 = vpop.eup %247 }
 0x14f   :  { %125 = vadd.xlane.f32.xlu2 %v248_v47  ;;  %v165_v14 = vor.u32 1.1754944e-38, %v164_v8  ;;  %vm163_vm1 = vcmp.eq.f32.partialorder %v162_v10, 8.507059e+37 }
 0x1ba   :  { %v124_v48 = vpop.xlane.xlu2 %123 }
 0x1bb   :  { %v127_v49 = vadd.f32 1e-06, %v124_v48 }
 0x1bd   :  { %249 = vlog2.f32 %v127_v49 }
 0x1c2   :  { %v126_v50 = vpop.xlane.xlu2 %125 }
 0x1c3   :  { %v250_v51 = vpop.eup %249  ;;  %v128_v52 = vadd.f32 1e-06, %v126_v50 }
 0x1c4   :  { %v130_v53 = vmul.f32 0.6931472, %v250_v51 }
 0x1c5   :  { %251 = vlog2.f32 %v128_v52 }
 0x1c6   :  { %v133_v54 = vsub.f32 %v115_v39, %v130_v53  ;;  %253 = vrcp.f32 %v145_v62 }
 0x1c7   :  { %255 = vrcp.f32 %v146_v63 }
 0x1c8   :  { %v147_v55 = vmul.f32 %v216_v35, %v133_v54 }
 0x1ca   :  { %149 = vadd.xlane.f32.xlu2 %v147_v55 }
 0x1cb   :  { %v252_v56 = vpop.eup %251 }
 0x1cc   :  { %v132_v57 = vmul.f32 0.6931472, %v252_v56  ;;  %v254_v0 = vpop.eup %253 }
 0x1cd   :  { %v256_v1 = vpop.eup %255  ;;  %v154_v2 = vmul.f32 %v254_v0, %v145_v62  ;;  %vm159_vm12 = vweird.f32 %v254_v0 }
 0x1ce   :  { %v134_v58 = vsub.f32 %v116_v43, %v132_v57  ;;  %v169_v3 = vmul.f32 %v256_v1, %v146_v63  ;;  %vm174_vm14 = vweird.f32 %v256_v1  ;;  %vm160_vm15 = vmor %vm158_vm11, %vm159_vm12 }
 0x1cf   :  { %v155_v4 = vsub.f32 1.0, %v154_v2  ;;  %vm175_vm0 = vmor %vm173_vm13, %vm174_vm14 }
 0x1d0   :  { %v148_v59 = vmul.f32 %v217_v38, %v134_v58  ;;  %v170_v5 = vsub.f32 1.0, %v169_v3 }
 0x1d1   :  { %v156_v6 = vmul.f32 %v254_v0, %v155_v4 }
 0x1d2   :  { %151 = vadd.xlane.f32.xlu0 %v148_v59  ;;  %v171_v7 = vmul.f32 %v256_v1, %v170_v5 }
 0x1d3   :  { %v157_v9 = vadd.f32 %v254_v0, %v156_v6 }
 0x1d4   :  { %v172_v12 = vadd.f32 %v256_v1, %v171_v7 }
 0x1d5   :  { %v161_v15 = vsel %vm160_vm15, %v254_v0, %v157_v9 }
 0x1d6   :  { %v176_v18 = vsel %vm175_vm0, %v256_v1, %v172_v12  ;;  %v166_v19 = vsel %vm163_vm1, %v165_v14, %v161_v15 }
 0x1d7   :  { %v181_v21 = vsel %vm178_vm2, %v180_v17, %v176_v18 }
 0x23d   :  { %v150_v16 = vpop.xlane.xlu2 %149 }
 0x23e   :  { %v167_v20 = vmul.f32 %v166_v19, %v150_v16 }
 0x240   :  { %v184_v24 = vsel %vm183_vm3, %v167_v20, 0.0 }
 0x245   :  { %v152_v22 = vpop.xlane.xlu0 %151 }
 0x246   :  { %v182_v23 = vmul.f32 %v181_v21, %v152_v22 }
 0x248   :  { %v185_v25 = vsel %vm183_vm3, %v182_v23, 0.0 }
 0x249   :  { %v186_v26 = vadd.f32 %v185_v25, %v184_v24 }
 0x24b   :  { %187 = vadd.xlane.f32.xlu2 %v186_v26 }
 0x2be   :  { %v188_v27 = vpop.xlane.xlu2 %187 }
 0x2bf   :  { %v189_v28 = vrot.slane %v188_v27, 4 }
 0x2c1   :  { %v190_v29 = vadd.f32 %v189_v28, %v188_v27 }
 0x2c3   :  { %v191_v30 = vrot.slane %v190_v29, 2 }
 0x2c5   :  { %v192_v31 = vadd.f32 %v191_v30, %v190_v29 }
 0x2c7   :  { %v193_v32 = vrot.slane %v192_v31, 1 }
 0x2c9   :  { %v194_v33 = vadd.f32 %v193_v32, %v192_v31 }
 0x2cb   :  { %234 = vpush %v194_v33 }
 0x2fc   :  { %s235_s7 = spop %234 }
 0x2fd   :  { %s196_s8 = ssub.f32 0.0, %s235_s7 }
 0x2ff   :  { %v197_v34 = vstv %s196_s8 }
 0x300   :  { %198 = vst [vmem:[#allocation5] sm:$0xff] %v197_v34 }
 0x301   :  { %209 = dma.vmem_to_hbm [thread:$0]  %s205_s3, 128, %s207_s6, [#allocation4]  }
 0x302   :  { %307 = dma.done.wait [#allocation4], 128  }
 0x303   :  { %308 = vsyncadd [#allocation4], 4294967168 }
 0x304   :  { %214 = vsyncpa [#allocation3], 1 }
 0x305   :  { %215 = vsyncpa [#allocation4], 1 }

</bundles_post_ra>
